<compile_context>
chip_gen: v6e
topology: v6e:2x2x1
jax: 0.10.0
libtpu: 0.0.40
codegen_flags: <defaults>
</compile_context>

<pallas_src>
import functools

import jax
import jax.numpy as jnp
from jax.experimental import pallas as pl
from jax.experimental.pallas import tpu as pltpu


HIDDEN = 300
HIDDEN_PAD = 384          # 3 * 128 lane-dense hidden width
LANE = 128
DEFAULT_BLOCK_BATCH = 2048


def _round_up(n, m):
    return ((n + m - 1) // m) * m


def _choose_tile(batch, block_batch):
    """Pick a batch tile (static Python ints only)."""
    block_batch = _round_up(max(block_batch, 8), 8)
    if batch >= 2 * block_batch:
        return block_batch
    if batch > 16:
        # Split into ~2 parallel grid steps so both v7x TensorCores get work.
        return min(_round_up(pl.cdiv(batch, 2), 8), block_batch)
    # Tiny batch: single full-dim block (exempt from the 8-sublane rule).
    return batch


def _mlp_kernel(x_ref, w1_ref, b1_ref, w2_ref, b2_ref, w3_ref, b3_ref, o_ref):
    # dense1 + relu  (bf16 MXU inputs, f32 accumulation, f32 elementwise)
    x = x_ref[...].astype(jnp.bfloat16)
    h1 = jnp.dot(x, w1_ref[...], preferred_element_type=jnp.float32) + b1_ref[...]
    h1 = jnp.maximum(h1, 0.0).astype(jnp.bfloat16)
    # dense2 + relu
    h2 = jnp.dot(h1, w2_ref[...], preferred_element_type=jnp.float32) + b2_ref[...]
    h2 = jnp.maximum(h2, 0.0).astype(jnp.bfloat16)
    # dense3 (no activation); bf16 store halves the writeback bytes and stays
    # an unmasked 128-lane vst.
    y = jnp.dot(h2, w3_ref[...], preferred_element_type=jnp.float32) + b3_ref[...]
    o_ref[...] = y.astype(o_ref.dtype)


@functools.partial(jax.jit, static_argnames=("out_size", "block_batch"))
def dqn_net_relu_forward(x, params, *, out_size, block_batch=DEFAULT_BLOCK_BATCH):
    """Forward pass of DQNNet_relu.

    x: (batch, input_size) float32.
    params: padded params from init_params (bf16 weights, f32 biases).
    out_size: the real (unpadded) number of outputs to return.
    """
    w1, b1, w2, b2, w3, b3 = params
    batch, in_features = x.shape
    out_pad = w3.shape[1]

    tile = _choose_tile(batch, block_batch)
    grid = (pl.cdiv(batch, tile),)   # last block clamped by Pallas; no jnp.pad

    full = lambda arr: pl.BlockSpec(arr.shape, lambda i: (0,) * arr.ndim)

    flops = 2 * batch * (
        in_features * HIDDEN_PAD + HIDDEN_PAD * HIDDEN_PAD + HIDDEN_PAD * out_pad
    )
    bytes_accessed = (
        (w1.size + w2.size + w3.size) * 2          # bf16 weights
        + (b1.size + b2.size + b3.size) * 4        # f32 biases
        + batch * in_features * 4                  # f32 input
        + batch * out_pad * 2                      # bf16 output
    )

    out = pl.pallas_call(
        _mlp_kernel,
        out_shape=jax.ShapeDtypeStruct((batch, out_pad), jnp.bfloat16),
        grid=grid,
        in_specs=[
            pl.BlockSpec((tile, in_features), lambda i: (i, 0)),  # x tile
            full(w1), full(b1),                                   # resident weights
            full(w2), full(b2),
            full(w3), full(b3),
        ],
        out_specs=pl.BlockSpec((tile, out_pad), lambda i: (i, 0)),
        compiler_params=pltpu.CompilerParams(
            dimension_semantics=("parallel",),
            vmem_limit_bytes=48 * 1024 * 1024,
        ),
        cost_estimate=pl.CostEstimate(
            flops=flops, transcendentals=0, bytes_accessed=bytes_accessed
        ),
    )(x, w1, b1, w2, b2, w3, b3)

    # Slice off the padded lanes and restore the nn.Linear f32 output dtype.
    return out[:, :out_size].astype(jnp.float32)


def init_params(key, input_size, output_size):
    """PyTorch nn.Linear-style init (uniform(-1/sqrt(fan_in), 1/sqrt(fan_in))).

    Weights are stored transposed (in_features, out_features) in bf16; biases
    as (1, out_features) in f32.  Hidden width is zero-padded 300->384 and the
    output width to a multiple of 128 so everything is lane-dense.  Zero pad
    rows/cols + zero pad bias keep the padded lanes exactly zero through ReLU,
    so they never leak into real outputs.
    """
    out_pad = _round_up(max(output_size, 1), LANE)

    def linear(k, fan_in, fan_out, fan_in_pad, fan_out_pad):
        kw, kb = jax.random.split(k)
        bound = 1.0 / jnp.sqrt(fan_in)
        w = jax.random.uniform(kw, (fan_in, fan_out), jnp.float32, -bound, bound)
        b = jax.random.uniform(kb, (1, fan_out), jnp.float32, -bound, bound)
        w = jnp.pad(w, ((0, fan_in_pad - fan_in), (0, fan_out_pad - fan_out)))
        b = jnp.pad(b, ((0, 0), (0, fan_out_pad - fan_out)))
        return w.astype(jnp.bfloat16), b.astype(jnp.float32)

    k1, k2, k3 = jax.random.split(key, 3)
    w1, b1 = linear(k1, input_size, HIDDEN, input_size, HIDDEN_PAD)
    w2, b2 = linear(k2, HIDDEN, HIDDEN, HIDDEN_PAD, HIDDEN_PAD)
    w3, b3 = linear(k3, HIDDEN, output_size, HIDDEN_PAD, out_pad)
    return (w1, b1, w2, b2, w3, b3)


def reference_forward(x, params, out_size):
    """Pure-JAX f32 reference using the same (padded, bf16) stored weights."""
    w1, b1, w2, b2, w3, b3 = params
    w1, w2, w3 = (w.astype(jnp.float32) for w in (w1, w2, w3))
    h1 = jnp.maximum(x @ w1 + b1, 0.0)
    h2 = jnp.maximum(h1 @ w2 + b2, 0.0)
    return (h2 @ w3 + b3)[:, :out_size]


if __name__ == "__main__":
    key = jax.random.PRNGKey(0)
    k_params, k_x1, k_x2, k_x3 = jax.random.split(key, 4)

    input_size = 8
    output_size = 4
    params = init_params(k_params, input_size, output_size)

    # Small demo batch (single full-dim block).
    batch = 2
    x = jax.random.normal(k_x1, (batch, input_size), jnp.float32)
    out = dqn_net_relu_forward(x, params, out_size=output_size)
    out = jax.block_until_ready(out)
    ref = reference_forward(x, params, output_size)
    assert out.shape == (batch, output_size), out.shape
    assert jnp.allclose(out, ref, atol=3e-2, rtol=3e-2), "mismatch vs JAX reference"

    # Moderate batch: split into 2 parallel grid steps with a clamped last block.
    batch2 = 300
    x2 = jax.random.normal(k_x2, (batch2, input_size), jnp.float32)
    out2 = dqn_net_relu_forward(x2, params, out_size=output_size)
    out2 = jax.block_until_ready(out2)
    ref2 = reference_forward(x2, params, output_size)
    assert out2.shape == (batch2, output_size), out2.shape
    assert jnp.allclose(out2, ref2, atol=3e-2, rtol=3e-2), "mismatch (2-step grid)"

    # Explicit small block_batch: multi-step grid (3 steps) + ragged last block.
    batch3 = 300
    x3 = jax.random.normal(k_x3, (batch3, input_size), jnp.float32)
    out3 = dqn_net_relu_forward(x3, params, out_size=output_size, block_batch=128)
    out3 = jax.block_until_ready(out3)
    ref3 = reference_forward(x3, params, output_size)
    assert out3.shape == (batch3, output_size), out3.shape
    assert jnp.allclose(out3, ref3, atol=3e-2, rtol=3e-2), "mismatch (multi-tile)"

    # TODO(synk): optim.Adam lives on the training side and is not part of forward().
    print("KERNEL_OK")
</pallas_src>

<mosaic_0001>
module attributes {stable_mosaic.version = 11 : i64} {
  func.func @_mlp_kernel(%arg0: i32, %arg1: memref<2x8xf32, #tpu.memory_space<vmem>>, %arg2: memref<8x384xbf16, #tpu.memory_space<vmem>>, %arg3: memref<1x384xf32, #tpu.memory_space<vmem>>, %arg4: memref<384x384xbf16, #tpu.memory_space<vmem>>, %arg5: memref<1x384xf32, #tpu.memory_space<vmem>>, %arg6: memref<384x128xbf16, #tpu.memory_space<vmem>>, %arg7: memref<1x128xf32, #tpu.memory_space<vmem>>, %arg8: memref<2x128xbf16, #tpu.memory_space<vmem>>) attributes {dimension_semantics = [#tpu.dimension_semantics<parallel>], iteration_bounds = array<i64: 1>, scalar_prefetch = 0 : i64, scratch_operands = 0 : i64, tpu.core_type = #tpu.core_type<tc>, window_params = [{transform_indices = @transform_0, window_bounds = array<i64: 2, 8>}, {pipeline_mode = #tpu.pipeline_mode<synchronous>, transform_indices = @transform_1, window_bounds = array<i64: 8, 384>}, {pipeline_mode = #tpu.pipeline_mode<synchronous>, transform_indices = @transform_2, window_bounds = array<i64: 1, 384>}, {pipeline_mode = #tpu.pipeline_mode<synchronous>, transform_indices = @transform_3, window_bounds = array<i64: 384, 384>}, {pipeline_mode = #tpu.pipeline_mode<synchronous>, transform_indices = @transform_4, window_bounds = array<i64: 1, 384>}, {pipeline_mode = #tpu.pipeline_mode<synchronous>, transform_indices = @transform_5, window_bounds = array<i64: 384, 128>}, {pipeline_mode = #tpu.pipeline_mode<synchronous>, transform_indices = @transform_6, window_bounds = array<i64: 1, 128>}, {transform_indices = @transform_7, window_bounds = array<i64: 2, 128>}]} {
    %c0 = arith.constant 0 : index
    %c0_0 = arith.constant 0 : index
    %0 = vector.load %arg1[%c0, %c0_0] : memref<2x8xf32, #tpu.memory_space<vmem>>, vector<2x8xf32>
    %1 = arith.truncf %0 : vector<2x8xf32> to vector<2x8xbf16>
    %c0_1 = arith.constant 0 : index
    %c0_2 = arith.constant 0 : index
    %2 = vector.load %arg2[%c0_1, %c0_2] : memref<8x384xbf16, #tpu.memory_space<vmem>>, vector<8x384xbf16>
    %cst = arith.constant dense<0.000000e+00> : vector<2x384xf32>
    %3 = tpu.matmul %1, %2, %cst {dimension_numbers = #tpu.dot_dimension_numbers<[1], [0], [0], [1], [0, 0, 1, 1], [], []>} : vector<2x8xbf16>, vector<8x384xbf16>, vector<2x384xf32> -> vector<2x384xf32>
    %c0_3 = arith.constant 0 : index
    %c0_4 = arith.constant 0 : index
    %4 = vector.load %arg3[%c0_3, %c0_4] : memref<1x384xf32, #tpu.memory_space<vmem>>, vector<1x384xf32>
    %5 = vector.broadcast %4 : vector<1x384xf32> to vector<2x384xf32>
    %6 = arith.addf %3, %5 : vector<2x384xf32>
    %cst_5 = arith.constant 0.000000e+00 : f32
    %7 = vector.broadcast %cst_5 : f32 to vector<2x384xf32>
    %8 = arith.maximumf %6, %7 : vector<2x384xf32>
    %9 = arith.truncf %8 : vector<2x384xf32> to vector<2x384xbf16>
    %c0_6 = arith.constant 0 : index
    %c0_7 = arith.constant 0 : index
    %10 = vector.load %arg4[%c0_6, %c0_7] : memref<384x384xbf16, #tpu.memory_space<vmem>>, vector<384x384xbf16>
    %cst_8 = arith.constant dense<0.000000e+00> : vector<2x384xf32>
    %11 = tpu.matmul %9, %10, %cst_8 {dimension_numbers = #tpu.dot_dimension_numbers<[1], [0], [0], [1], [0, 0, 1, 1], [], []>} : vector<2x384xbf16>, vector<384x384xbf16>, vector<2x384xf32> -> vector<2x384xf32>
    %c0_9 = arith.constant 0 : index
    %c0_10 = arith.constant 0 : index
    %12 = vector.load %arg5[%c0_9, %c0_10] : memref<1x384xf32, #tpu.memory_space<vmem>>, vector<1x384xf32>
    %13 = vector.broadcast %12 : vector<1x384xf32> to vector<2x384xf32>
    %14 = arith.addf %11, %13 : vector<2x384xf32>
    %cst_11 = arith.constant 0.000000e+00 : f32
    %15 = vector.broadcast %cst_11 : f32 to vector<2x384xf32>
    %16 = arith.maximumf %14, %15 : vector<2x384xf32>
    %17 = arith.truncf %16 : vector<2x384xf32> to vector<2x384xbf16>
    %c0_12 = arith.constant 0 : index
    %c0_13 = arith.constant 0 : index
    %18 = vector.load %arg6[%c0_12, %c0_13] : memref<384x128xbf16, #tpu.memory_space<vmem>>, vector<384x128xbf16>
    %cst_14 = arith.constant dense<0.000000e+00> : vector<2x128xf32>
    %19 = tpu.matmul %17, %18, %cst_14 {dimension_numbers = #tpu.dot_dimension_numbers<[1], [0], [0], [1], [0, 0, 1, 1], [], []>} : vector<2x384xbf16>, vector<384x128xbf16>, vector<2x128xf32> -> vector<2x128xf32>
    %c0_15 = arith.constant 0 : index
    %c0_16 = arith.constant 0 : index
    %20 = vector.load %arg7[%c0_15, %c0_16] : memref<1x128xf32, #tpu.memory_space<vmem>>, vector<1x128xf32>
    %21 = vector.broadcast %20 : vector<1x128xf32> to vector<2x128xf32>
    %22 = arith.addf %19, %21 : vector<2x128xf32>
    %23 = arith.truncf %22 : vector<2x128xf32> to vector<2x128xbf16>
    %c0_17 = arith.constant 0 : index
    %c0_18 = arith.constant 0 : index
    %24 = vector.load %arg8[%c0_17, %c0_18] : memref<2x128xbf16, #tpu.memory_space<vmem>>, vector<2x128xbf16>
    tpu.vector_store %arg8[%c0_17, %c0_18], %23 {strides = array<i32>} : memref<2x128xbf16, #tpu.memory_space<vmem>>, vector<2x128xbf16>,
    return
  }
  func.func @transform_0(%arg0: i32) -> (i32, i32) {
    %c0_i32 = arith.constant 0 : i32
    %c0_i32_0 = arith.constant 0 : i32
    return %arg0, %c0_i32 : i32, i32
  }
  func.func @transform_1(%arg0: i32) -> (i32, i32) {
    %c0_i32 = arith.constant 0 : i32
    %c0_i32_0 = arith.constant 0 : i32
    %c0_i32_1 = arith.constant 0 : i32
    return %c0_i32, %c0_i32_0 : i32, i32
  }
  func.func @transform_2(%arg0: i32) -> (i32, i32) {
    %c0_i32 = arith.constant 0 : i32
    %c0_i32_0 = arith.constant 0 : i32
    %c0_i32_1 = arith.constant 0 : i32
    return %c0_i32, %c0_i32_0 : i32, i32
  }
  func.func @transform_3(%arg0: i32) -> (i32, i32) {
    %c0_i32 = arith.constant 0 : i32
    %c0_i32_0 = arith.constant 0 : i32
    %c0_i32_1 = arith.constant 0 : i32
    return %c0_i32, %c0_i32_0 : i32, i32
  }
  func.func @transform_4(%arg0: i32) -> (i32, i32) {
    %c0_i32 = arith.constant 0 : i32
    %c0_i32_0 = arith.constant 0 : i32
    %c0_i32_1 = arith.constant 0 : i32
    return %c0_i32, %c0_i32_0 : i32, i32
  }
  func.func @transform_5(%arg0: i32) -> (i32, i32) {
    %c0_i32 = arith.constant 0 : i32
    %c0_i32_0 = arith.constant 0 : i32
    %c0_i32_1 = arith.constant 0 : i32
    return %c0_i32, %c0_i32_0 : i32, i32
  }
  func.func @transform_6(%arg0: i32) -> (i32, i32) {
    %c0_i32 = arith.constant 0 : i32
    %c0_i32_0 = arith.constant 0 : i32
    %c0_i32_1 = arith.constant 0 : i32
    return %c0_i32, %c0_i32_0 : i32, i32
  }
  func.func @transform_7(%arg0: i32) -> (i32, i32) {
    %c0_i32 = arith.constant 0 : i32
    %c0_i32_0 = arith.constant 0 : i32
    return %arg0, %c0_i32 : i32, i32
  }
}

</mosaic_0001>

<bundles_post_ra>
// kernel: dqn_net_relu_forward.1
= control target key start
LH: loop header
LB: loop body
LE: loop exit
PB: predicated region body
PF: predicated region fallthrough
CT: control target
= control target key end

     0   :  { %12 = vsyncpa [#allocation3], 0  ;;  %s1718_s0 = inlined_call_operand.hbm [shape: f32[2,8], index: 0, kind: input, shape index: {}]   ;;  %s1719_s1 = inlined_call_operand.hbm [shape: bf16[8,384], index: 1, kind: input, shape index: {}]   ;;  %s1720_s2 = inlined_call_operand.vmem [shape: f32[1,384], index: 2, kind: input, shape index: {}]   ;;  %s1721_s3 = inlined_call_operand.hbm [shape: bf16[384,384], index: 3, kind: input, shape index: {}]   ;;  %s1722_s4 = inlined_call_operand.vmem [shape: f32[1,384], index: 4, kind: input, shape index: {}]   ;;  %s1723_s5 = inlined_call_operand.hbm [shape: bf16[384,128], index: 5, kind: input, shape index: {}]   ;;  %s1724_s6 = inlined_call_operand.vmem [shape: f32[1,128], index: 6, kind: input, shape index: {}]   ;;  %s1725_s7 = inlined_call_operand.vmem [shape: bf16[2,128], index: 7, kind: output, shape index: {}]  }
   0x1   :  { %13 = vsyncpa [#allocation5], 0 }
   0x2   :  { %14 = vsyncpa [#allocation8], 0  ;;  %s1594_s24 = smov [#allocation4]   ;;  %s1595_s26 = smov [#allocation2]  }
   0x3   :  { %s31_s25 = sshll.u32 %s1594_s24, 4  ;;  %s21_s27 = sshll.u32 %s1595_s26, 4  ;;  %s32_s25 = int_to_ptr.vmem [resolvable:$true] %s31_s25  ;;  %s22_s27 = int_to_ptr.vmem [resolvable:$true] %s21_s27 }
   0x4   :  { %s1516_s28 = scalar_lea.vmem %s32_s25, 192  ;;  %p1521_p1 = scmp.lt.s32.totalorder %s32_s25, %s32_s25 }
   0x5   :  { %p1517_p0 = scmp.ne.s32.totalorder %s32_s25, %s1516_s28  ;;  %p1522_p2 = scmp.lt.s32.totalorder %s1516_s28, %s1516_s28 }
   0x7   :  { %p1523_p3 = por %p1522_p2, %p1521_p1 }
   0x9   :  { %p1524_p4 = pnand %p1523_p3, %p1517_p0 }
   0xb   :  { %1527 = shalt.err (!%p1524_p4)
}
   0xc   :  { %34 = dma.hbm_to_vmem [thread:$0]  %s1719_s1, 192, %s32_s25, [#allocation5]  }
   0xd   :  { %s1536_s8 = scalar_lea.vmem %s22_s27, 32  ;;  %p1541_p6 = scmp.lt.s32.totalorder %s22_s27, %s22_s27 }
   0xe   :  { %p1537_p5 = scmp.ne.s32.totalorder %s22_s27, %s1536_s8  ;;  %p1542_p7 = scmp.lt.s32.totalorder %s1536_s8, %s1536_s8 }
  0x10   :  { %p1543_p8 = por %p1542_p7, %p1541_p6 }
  0x12   :  { %p1544_p9 = pnand %p1543_p8, %p1537_p5 }
  0x14   :  { %1547 = shalt.err (!%p1544_p9)
}
  0x15   :  { %24 = dma.hbm_to_vmem [thread:$0]  %s1718_s0, 32, %s22_s27, [#allocation3]  }
  0x16   :  { %s1596_s11 = smov [#allocation6]  }
  0x17   :  { %s42_s12 = sshll.u32 %s1596_s11, 4  ;;  %s43_s12 = int_to_ptr.vmem [resolvable:$true] %s42_s12 }
  0x18   :  { %s1556_s13 = scalar_lea.vmem %s43_s12, 9216  ;;  %p1561_p11 = scmp.lt.s32.totalorder %s43_s12, %s43_s12 }
  0x19   :  { %p1557_p10 = scmp.ne.s32.totalorder %s43_s12, %s1556_s13  ;;  %p1562_p12 = scmp.lt.s32.totalorder %s1556_s13, %s1556_s13 }
  0x1b   :  { %p1563_p13 = por %p1562_p12, %p1561_p11 }
  0x1d   :  { %p1564_p0 = pnand %p1563_p13, %p1557_p10 }
  0x1f   :  { %1567 = shalt.err (!%p1564_p0)
}
  0x20   :  { %s1597_s1 = smov 192   ;;  %s1598_s14 = smov 12  }
  0x21   :  { %48 = dma.hbm_to_vmem [thread:$0]  %s1721_s3, 9216, %s43_s12, [#allocation5], %s1597_s1, %s1597_s1, %s1598_s14  }
  0x22   :  { %s1599_s17 = smov [#allocation7]  }
  0x23   :  { %s56_s18 = sshll.u32 %s1599_s17, 4  ;;  %s57_s18 = int_to_ptr.vmem [resolvable:$true] %s56_s18 }
  0x24   :  { %s1576_s0 = scalar_lea.vmem %s57_s18, 3072  ;;  %p1581_p2 = scmp.lt.s32.totalorder %s57_s18, %s57_s18 }
  0x25   :  { %p1577_p1 = scmp.ne.s32.totalorder %s57_s18, %s1576_s0  ;;  %p1582_p3 = scmp.lt.s32.totalorder %s1576_s0, %s1576_s0 }
  0x27   :  { %p1583_p4 = por %p1582_p3, %p1581_p2 }
  0x29   :  { %p1584_p5 = pnand %p1583_p4, %p1577_p1 }
  0x2b   :  { %1587 = shalt.err (!%p1584_p5)
}
  0x2c   :  { %s1600_s19 = smov 64   ;;  %s1601_s20 = smov 4  }
  0x2d   :  { %62 = dma.hbm_to_vmem [thread:$0]  %s1723_s5, 3072, %s57_s18, [#allocation8], %s1600_s19, %s1600_s19, %s1601_s20  }
  0x2e   :  { %1588 = dma.done.wait [#allocation3], 32  }
  0x2f   :  { %1589 = vsyncadd [#allocation3], 4294967264 }
  0x30   :  { %1590 = dma.done.wait [#allocation5], 9408  }
  0x31   :  { %1591 = vsyncadd [#allocation5], 4294957888 }
  0x32   :  { %1592 = dma.done.wait [#allocation8], 3072  }
  0x33   :  { %1593 = vsyncadd [#allocation8], 4294964224  ;;  %v1602_v0 = vmov 0   ;;  %v80_v1 = vld [vmem:[#allocation4] sm:$0xff]  ;;  %vm111_vm0 = vcmask 1043456   ;;  %vm107_vm1 = vcmask 64512   ;;  %v84_v59 = vlaneseq }
  0x34   :  { %153 = vmatprep.mubr.bf16.mxu1 %v1602_v0  ;;  %v78_v2 = vld [vmem:[#allocation2] sm:$0x3]  ;;  %v1162_v3 = vcombine.high %v80_v1, %v80_v1  ;;  %v1161_v4 = vcombine.low %v80_v1, %v80_v1  ;;  %v1387_v5 = vld [vmem:[#allocation4 + $0x8] ss:$0 sps:$4 sm:$0xff]   ;;  %v1388_v6 = vld [vmem:[#allocation6 + $0xac] ss:$12 sps:$4 sm:$0xff]  }
  0x35   :  { %v1390_v7 = vld [vmem:[#allocation6 + $0xa8] ss:$12 sps:$4 sm:$0xff]   ;;  %v79_v9 = vpack.c.bf16 %v78_v2, %v78_v2  ;;  %705 = vmatprep.subr.bf16.mxu0 %v1388_v6  ;;  %v1603_v11 = vmov 0.0   ;;  %v119_v12 = vsel %vm111_vm0, %v1387_v5, 0  ;;  %v1393_v13 = vld [vmem:[#allocation6 + $0x90] ss:$12 sps:$4 sm:$0xff]  }
  0x36   :  { %1164 = vmatprep.subr.msk.bf16.mxu1 %vm111_vm0, %v1162_v3  ;;  %v113_v8 = vsel %vm111_vm0, %v1161_v4, 0  ;;  %v1391_v10 = vld [vmem:[#allocation6 + $0x94] ss:$12 sps:$4 sm:$0xff]   ;;  %706 = vmatpush1.bf16.msra.mxu0 %v1390_v7  ;;  %v1394_v14 = vld [vmem:[#allocation6 + $0x7c] ss:$12 sps:$4 sm:$0xff]   ;;  %vm1604_vm2 = vmmov 0  }
  0x37   :  { %136 = vmatpush1.bf16.msra.mxu1 %v113_v8  ;;  %707 = vmatprep.subr.bf16.mxu0 %v1391_v10  ;;  %v1396_v15 = vld [vmem:[#allocation6 + $0x78] ss:$12 sps:$4 sm:$0xff]   ;;  %v1399_v17 = vld [vmem:[#allocation6 + $0x60] ss:$12 sps:$4 sm:$0xff]   ;;  %v1418_v19 = vld [vmem:[#allocation6 + $0x228] ss:$12 sps:$4 sm:$0xff]  }
  0x38   :  { %1328 = vmatprep.subr.bf16.mxu1 %v1603_v11  ;;  %v1397_v16 = vld [vmem:[#allocation6 + $0x64] ss:$12 sps:$4 sm:$0xff]   ;;  %v1400_v18 = vld [vmem:[#allocation6 + $0x4c] ss:$12 sps:$4 sm:$0xff]   ;;  %v1402_v21 = vld [vmem:[#allocation6 + $0x48] ss:$12 sps:$4 sm:$0xff]  }
  0x39   :  { %v1420_v20 = vld [vmem:[#allocation6 + $0x22c] ss:$12 sps:$4 sm:$0xff]   ;;  %v1403_v22 = vld [vmem:[#allocation6 + $0x34] ss:$12 sps:$4 sm:$0xff]   ;;  %v1424_v23 = vld [vmem:[#allocation6 + $0x210] ss:$12 sps:$4 sm:$0xff]  }
  0x3a   :  { %1165 = vmatmul.mubr.msk.bf16.vlgmr.msra.gmra.mxu1 %vm107_vm1, %v79_v9  ;;  %708 = vmatpush1.bf16.msra.mxu0 %v1393_v13  ;;  %v1426_v24 = vld [vmem:[#allocation6 + $0x214] ss:$12 sps:$4 sm:$0xff]   ;;  %v1405_v25 = vld [vmem:[#allocation6 + $0x30] ss:$12 sps:$4 sm:$0xff]   ;;  %v1430_v28 = vld [vmem:[#allocation6 + $0x1f8] ss:$12 sps:$4 sm:$0xff]  }
  0x3b   :  { %1329 = vmatpush3.bf16.msra.mxu1 %v119_v12  ;;  %1330 = vmatprep.mubr.msk.bf16.mxu1 %vm1604_vm2, %v1603_v11  ;;  %v1432_v26 = vld [vmem:[#allocation6 + $0x1fc] ss:$12 sps:$4 sm:$0xff]   ;;  %v1438_v29 = vld [vmem:[#allocation6 + $0x1e4] ss:$12 sps:$4 sm:$0xff]   ;;  %v1436_v32 = vld [vmem:[#allocation6 + $0x1e0] ss:$12 sps:$4 sm:$0xff]  }
  0x3c   :  { %709 = vmatprep.subr.bf16.mxu0 %v1394_v14  ;;  %746 = vmatprep.subr.bf16.mxu1 %v1420_v20  ;;  %v1406_v27 = vld [vmem:[#allocation6 + $0x1c] ss:$12 sps:$4 sm:$0xff]   ;;  %v1408_v30 = vld [vmem:[#allocation6 + $0x18] ss:$12 sps:$4 sm:$0xff]   ;;  %v1411_v34 = vld [vmem:[#allocation6] ss:$12 sps:$4 sm:$0xff]  }
  0x3d   :  { %v1409_v31 = vld [vmem:[#allocation6 + $0x4] ss:$12 sps:$4 sm:$0xff]   ;;  %v1444_v33 = vld [vmem:[#allocation6 + $0x1cc] ss:$12 sps:$4 sm:$0xff]   ;;  %v1442_v36 = vld [vmem:[#allocation6 + $0x1c8] ss:$12 sps:$4 sm:$0xff]  }
  0x3e   :  { %710 = vmatpush1.bf16.msra.mxu0 %v1396_v15  ;;  %v1412_v35 = vld [vmem:[#allocation6 + $0x16c] ss:$12 sps:$4 sm:$0xff]   ;;  %v1414_v37 = vld [vmem:[#allocation6 + $0x168] ss:$12 sps:$4 sm:$0xff]   ;;  %v1417_v39 = vld [vmem:[#allocation6 + $0x150] ss:$12 sps:$4 sm:$0xff]  }
  0x3f   :  { %711 = vmatprep.subr.bf16.mxu0 %v1397_v16  ;;  %v1415_v38 = vld [vmem:[#allocation6 + $0x154] ss:$12 sps:$4 sm:$0xff]   ;;  %v1421_v40 = vld [vmem:[#allocation6 + $0x13c] ss:$12 sps:$4 sm:$0xff]   ;;  %v1423_v41 = vld [vmem:[#allocation6 + $0x138] ss:$12 sps:$4 sm:$0xff]  }
  0x40   :  { %v1427_v42 = vld [vmem:[#allocation6 + $0x124] ss:$12 sps:$4 sm:$0xff]   ;;  %v1429_v43 = vld [vmem:[#allocation6 + $0x120] ss:$12 sps:$4 sm:$0xff]   ;;  %v1435_v45 = vld [vmem:[#allocation6 + $0x108] ss:$12 sps:$4 sm:$0xff]  }
  0x41   :  { %v1433_v44 = vld [vmem:[#allocation6 + $0x10c] ss:$12 sps:$4 sm:$0xff]   ;;  %v1439_v46 = vld [vmem:[#allocation6 + $0xf4] ss:$12 sps:$4 sm:$0xff]   ;;  %v1441_v47 = vld [vmem:[#allocation6 + $0xf0] ss:$12 sps:$4 sm:$0xff]  }
  0x42   :  { %1331 = vmatmul.mubr.msk.bf16.vlgmr.msra.gmra.mxu1 %vm107_vm1, %v79_v9  ;;  %712 = vmatpush1.bf16.msra.mxu0 %v1399_v17  ;;  %v1445_v48 = vld [vmem:[#allocation6 + $0xdc] ss:$12 sps:$4 sm:$0xff]   ;;  %v1447_v49 = vld [vmem:[#allocation6 + $0xd8] ss:$12 sps:$4 sm:$0xff]   ;;  %v1450_v50 = vld [vmem:[#allocation6 + $0x1b4] ss:$12 sps:$4 sm:$0xff]  }
  0x43   :  { %778 = vmatprep.mubr.bf16.mxu1 %v1602_v0  ;;  %713 = vmatprep.subr.bf16.mxu0 %v1400_v18  ;;  %v1448_v51 = vld [vmem:[#allocation6 + $0x1b0] ss:$12 sps:$4 sm:$0xff]   ;;  %v1453_v53 = vld [vmem:[#allocation6 + $0xc0] ss:$12 sps:$4 sm:$0xff]   ;;  %v1454_v55 = vld [vmem:[#allocation6 + $0x198] ss:$12 sps:$4 sm:$0xff]  }
  0x44   :  { %747 = vmatpush1.bf16.msra.mxu1 %v1418_v19  ;;  %v1451_v52 = vld [vmem:[#allocation6 + $0xc4] ss:$12 sps:$4 sm:$0xff]   ;;  %v1456_v54 = vld [vmem:[#allocation6 + $0x19c] ss:$12 sps:$4 sm:$0xff]   ;;  %v1457_v57 = vld [vmem:[#allocation6 + $0x180] ss:$12 sps:$4 sm:$0xff]  }
  0x45   :  { %748 = vmatprep.subr.bf16.mxu1 %v1426_v24  ;;  %v1459_v56 = vld [vmem:[#allocation6 + $0x184] ss:$12 sps:$4 sm:$0xff]   ;;  %v1666_v60 = vshrl.u32 %v84_v59, 7 }
  0x46   :  { %714 = vmatpush1.bf16.msra.mxu0 %v1402_v21  ;;  %v1461_v58 = vld [vmem:[#allocation6 + $0x170] ss:$12 sps:$4 sm:$0xff]   ;;  %v1462_v20 = vld [vmem:[#allocation6 + $0x218] ss:$12 sps:$4 sm:$0xff]  }
  0x47   :  { %715 = vmatprep.subr.bf16.mxu0 %v1403_v22  ;;  %v86_v61 = vsub.s32 0, %v1666_v60  ;;  %v82_v62 = vld [vmem:[%s1720_s2] sm:$0x7]  ;;  %v90_v63 = vsub.s32 1, %v1666_v60  ;;  %v94_v4 = vsub.s32 2, %v1666_v60  ;;  %v1498_v59 = vld [vmem:[#allocation7 + $0x40] sm:$0xff]  }
  0x48   :  { %749 = vmatpush1.bf16.msra.mxu1 %v1424_v23  ;;  %v1460_v14 = vld [vmem:[#allocation6 + $0x230] ss:$12 sps:$4 sm:$0xff]   ;;  %v1464_v24 = vld [vmem:[#allocation6 + $0x158] ss:$12 sps:$4 sm:$0xff]  }
  0x49   :  { %750 = vmatprep.subr.bf16.mxu1 %v1432_v26  ;;  %v87_v0 = vrot.slane %v82_v62, %v86_v61  ;;  %v91_v1 = vrot.slane %v82_v62, %v90_v63  ;;  %v95_v10 = vrot.slane %v82_v62, %v94_v4  ;;  %v1463_v22 = vld [vmem:[#allocation6 + $0xb0] ss:$12 sps:$4 sm:$0xff]   ;;  %v1465_v26 = vld [vmem:[#allocation6 + $0x200] ss:$12 sps:$4 sm:$0xff]  }
  0x4a   :  { %716 = vmatpush1.bf16.msra.mxu0 %v1405_v25  ;;  %v1499_v62 = vld [vmem:[#allocation7] sm:$0xff]  }
  0x4b   :  { %717 = vmatprep.subr.bf16.mxu0 %v1406_v27  ;;  %v1466_v27 = vld [vmem:[#allocation6 + $0x98] ss:$12 sps:$4 sm:$0xff]  }
  0x4c   :  { %751 = vmatpush1.bf16.msra.mxu1 %v1430_v28  ;;  %v1467_v28 = vld [vmem:[#allocation6 + $0x140] ss:$12 sps:$4 sm:$0xff]  }
  0x4d   :  { %752 = vmatprep.subr.bf16.mxu1 %v1438_v29  ;;  %v1468_v29 = vld [vmem:[#allocation6 + $0x1e8] ss:$12 sps:$4 sm:$0xff]  }
  0x4e   :  { %718 = vmatpush1.bf16.msra.mxu0 %v1408_v30  ;;  %v1469_v30 = vld [vmem:[#allocation6 + $0x80] ss:$12 sps:$4 sm:$0xff]  }
  0x4f   :  { %719 = vmatprep.subr.bf16.mxu0 %v1409_v31  ;;  %v1470_v31 = vld [vmem:[#allocation6 + $0x128] ss:$12 sps:$4 sm:$0xff]  }
  0x50   :  { %753 = vmatpush1.bf16.msra.mxu1 %v1436_v32  ;;  %v1471_v32 = vld [vmem:[#allocation6 + $0x1d0] ss:$12 sps:$4 sm:$0xff]  }
  0x51   :  { %754 = vmatprep.subr.bf16.mxu1 %v1444_v33  ;;  %v1472_v33 = vld [vmem:[#allocation6 + $0x68] ss:$12 sps:$4 sm:$0xff]  }
  0x52   :  { %720 = vmatpush1.bf16.msra.mxu0 %v1411_v34  ;;  %v1473_v34 = vld [vmem:[#allocation6 + $0x110] ss:$12 sps:$4 sm:$0xff]  }
  0x53   :  { %721 = vmatprep.subr.bf16.mxu0 %v1412_v35  ;;  %v1474_v35 = vld [vmem:[#allocation6 + $0x1b8] ss:$12 sps:$4 sm:$0xff]  }
  0x54   :  { %755 = vmatpush1.bf16.msra.mxu1 %v1442_v36  ;;  %v1475_v36 = vld [vmem:[#allocation6 + $0x50] ss:$12 sps:$4 sm:$0xff]  }
  0x55   :  { %756 = vmatprep.subr.bf16.mxu1 %v1450_v50  ;;  %v1489_v50 = vld [vmem:[#allocation7 + $0x28] sm:$0xff]  }
  0x56   :  { %722 = vmatpush2.bf16.msra.mxu0 %v1414_v37  ;;  %v1476_v37 = vld [vmem:[#allocation6 + $0xf8] ss:$12 sps:$4 sm:$0xff]  }
  0x57   :  { %723 = vmatprep.subr.bf16.mxu0 %v1415_v38  ;;  %v1477_v38 = vld [vmem:[#allocation6 + $0x1a0] ss:$12 sps:$4 sm:$0xff]  }
  0x58   :  { %757 = vmatpush1.bf16.msra.mxu1 %v1448_v51  ;;  %v1490_v51 = vld [vmem:[#allocation7 + $0x60] sm:$0xff]  }
  0x59   :  { %758 = vmatprep.subr.bf16.mxu1 %v1456_v54  ;;  %v1493_v54 = vld [vmem:[#allocation7 + $0x18] sm:$0xff]  }
  0x5a   :  { %724 = vmatpush2.bf16.msra.mxu0 %v1417_v39  ;;  %v1478_v39 = vld [vmem:[#allocation6 + $0x38] ss:$12 sps:$4 sm:$0xff]  }
  0x5b   :  { %725 = vmatprep.subr.bf16.mxu0 %v1421_v40  ;;  %v1479_v40 = vld [vmem:[#allocation6 + $0xe0] ss:$12 sps:$4 sm:$0xff]  }
  0x5c   :  { %759 = vmatpush1.bf16.msra.mxu1 %v1454_v55  ;;  %v1494_v55 = vld [vmem:[#allocation7 + $0x50] sm:$0xff]  }
  0x5d   :  { %760 = vmatprep.subr.bf16.mxu1 %v1459_v56  ;;  %v1495_v56 = vld [vmem:[#allocation7 + $0x10] sm:$0xff]  }
  0x5e   :  { %726 = vmatpush2.bf16.msra.mxu0 %v1423_v41  ;;  %v1480_v41 = vld [vmem:[#allocation6 + $0x188] ss:$12 sps:$4 sm:$0xff]  }
  0x5f   :  { %727 = vmatprep.subr.bf16.mxu0 %v1427_v42  ;;  %v1481_v42 = vld [vmem:[#allocation6 + $0x20] ss:$12 sps:$4 sm:$0xff]  }
  0x60   :  { %761 = vmatpush1.bf16.msra.mxu1 %v1457_v57  ;;  %v1496_v57 = vld [vmem:[#allocation7 + $0x48] sm:$0xff]  }
  0x61   :  { %1266 = vmatprep.subr.bf16.mxu1 %v1461_v58  ;;  %v1497_v58 = vld [vmem:[#allocation7 + $0x8] sm:$0xff]  }
  0x62   :  { %728 = vmatpush2.bf16.msra.mxu0 %v1429_v43  ;;  %v1482_v43 = vld [vmem:[#allocation6 + $0xc8] ss:$12 sps:$4 sm:$0xff]  }
  0x63   :  { %729 = vmatprep.subr.bf16.mxu0 %v1433_v44  ;;  %v1483_v44 = vld [vmem:[#allocation6 + $0x8] ss:$12 sps:$4 sm:$0xff]  }
  0x66   :  { %730 = vmatpush2.bf16.msra.mxu0 %v1435_v45  ;;  %v1484_v45 = vld [vmem:[#allocation7 + $0x78] sm:$0xff]  }
  0x67   :  { %731 = vmatprep.subr.bf16.mxu0 %v1439_v46  ;;  %v1485_v46 = vld [vmem:[#allocation7 + $0x38] sm:$0xff]  }
  0x6a   :  { %732 = vmatpush2.bf16.msra.mxu0 %v1441_v47  ;;  %v1486_v47 = vld [vmem:[#allocation7 + $0x70] sm:$0xff]  }
  0x6b   :  { %733 = vmatprep.subr.bf16.mxu0 %v1445_v48  ;;  %v1487_v48 = vld [vmem:[#allocation7 + $0x30] sm:$0xff]  }
  0x6e   :  { %734 = vmatpush2.bf16.msra.mxu0 %v1447_v49  ;;  %v1488_v49 = vld [vmem:[#allocation7 + $0x68] sm:$0xff]  }
  0x6f   :  { %735 = vmatprep.subr.bf16.mxu0 %v1451_v52  ;;  %v1491_v52 = vld [vmem:[#allocation7 + $0x20] sm:$0xff]  }
  0x72   :  { %736 = vmatpush2.bf16.msra.mxu0 %v1453_v53  ;;  %v1492_v53 = vld [vmem:[#allocation7 + $0x58] sm:$0xff]  }
  0x73   :  { %1334 = vmatprep.subr.bf16.mxu0 %v1603_v11 }
  0xfa   :  { %v155_v2 = vpop.f32.mrf.mxu1 }
  0xfb   :  { %v156_v3 = vadd.f32 %v155_v2, %v87_v0  ;;  %v1500_v0 = vld [vmem:[#allocation7 + $0xb8] sm:$0xff]   ;;  %v1502_v2 = vld [vmem:[#allocation7 + $0xa8] sm:$0xff]  }
  0xfc   :  { %v157_v5 = vpop.f32.mrf.mxu1 }
  0xfd   :  { %v158_v6 = vadd.f32 %v157_v5, %v91_v1  ;;  %v202_v7 = vmax.f32 %v156_v3, 0.0  ;;  %v1501_v1 = vld [vmem:[#allocation7 + $0xb0] sm:$0xff]   ;;  %v1503_v3 = vld [vmem:[#allocation7 + $0xa0] sm:$0xff]   ;;  %v1504_v5 = vld [vmem:[#allocation7 + $0x98] sm:$0xff]  }
  0xfe   :  { %v159_v8 = vpop.f32.mrf.mxu1 }
  0xff   :  { %v203_v9 = vmax.f32 %v158_v6, 0.0  ;;  %v1680_v15 = vpack.c.bf16 %v202_v7, %v202_v7  ;;  %v1505_v6 = vld [vmem:[#allocation7 + $0x90] sm:$0xff]   ;;  %v1506_v7 = vld [vmem:[#allocation7 + $0x88] sm:$0xff]   ;;  %v1507_v8 = vld [vmem:[#allocation7 + $0x80] sm:$0xff]  }
 0x100   :  { %v160_v12 = vpop.f32.mrf.mxu1 }
 0x101   :  { %v206_v13 = vpack.c.bf16 %v203_v9, %v203_v9  ;;  %v304_v9 = vld [vmem:[%s1722_s4] sm:$0x7] }
 0x102   :  { %v196_v16 = vpop.f32.mrf.mxu1 }
 0x103   :  { %v197_v17 = vadd.f32 %v196_v16, %v95_v10  ;;  %737 = vmatprep.mubr.bf16.mxu0 %v206_v13  ;;  %v309_v10 = vrot.slane %v304_v9, %v86_v61 }
 0x104   :  { %v1332_v18 = vpop.f32.mrf.mxu1  ;;  %738 = vmatmul.mubr.bf16.vlgmr.msra.gmra.mxu0 %v1680_v15 }
 0x105   :  { %v204_v19 = vmax.f32 %v197_v17, 0.0  ;;  %1335 = vmatpush3.bf16.msra.mxu0 %v1460_v14  ;;  %1350 = vmatprep.mubr.msk.bf16.mxu0 %vm1604_vm2, %v1603_v11 }
 0x106   :  { %v199_v21 = vpop.f32.mrf.mxu1  ;;  %1336 = vmatprep.subr.bf16.mxu0 %v1603_v11 }
 0x107   :  { %v207_v23 = vpack.c.bf16 %v204_v19, %v204_v19 }
 0x108   :  { %v1333_v25 = vpop.f32.mrf.mxu1 }
 0x109   :  { %1337 = vmatpush3.bf16.msra.mxu0 %v1462_v20  ;;  %779 = vmatmul.mubr.bf16.vlgmr.msra.gmra.mxu1 %v207_v23 }
 0x10a   :  { %1267 = vmatpush3.bf16.msra.mxu1 %v1463_v22  ;;  %819 = vmatprep.mubr.bf16.mxu1 %v206_v13  ;;  %v313_v13 = vrot.slane %v304_v9, %v90_v63 }
 0x10b   :  { %1338 = vmatprep.subr.bf16.mxu0 %v1603_v11  ;;  %1268 = vmatprep.subr.bf16.mxu1 %v1464_v24 }
 0x10d   :  { %1339 = vmatpush3.bf16.msra.mxu0 %v1465_v26 }
 0x10e   :  { %1269 = vmatpush3.bf16.msra.mxu1 %v1466_v27  ;;  %1340 = vmatprep.subr.bf16.mxu0 %v1603_v11 }
 0x10f   :  { %1270 = vmatprep.subr.bf16.mxu1 %v1467_v28 }
 0x111   :  { %1341 = vmatpush3.bf16.msra.mxu0 %v1468_v29 }
 0x112   :  { %1271 = vmatpush3.bf16.msra.mxu1 %v1469_v30  ;;  %1342 = vmatprep.subr.bf16.mxu0 %v1603_v11 }
 0x113   :  { %1272 = vmatprep.subr.bf16.mxu1 %v1470_v31  ;;  %v317_v31 = vrot.slane %v304_v9, %v94_v4 }
 0x115   :  { %1343 = vmatpush3.bf16.msra.mxu0 %v1471_v32 }
 0x116   :  { %1273 = vmatpush3.bf16.msra.mxu1 %v1472_v33  ;;  %1344 = vmatprep.subr.bf16.mxu0 %v1603_v11 }
 0x117   :  { %1274 = vmatprep.subr.bf16.mxu1 %v1473_v34 }
 0x119   :  { %1345 = vmatpush3.bf16.msra.mxu0 %v1474_v35 }
 0x11a   :  { %1275 = vmatpush3.bf16.msra.mxu1 %v1475_v36  ;;  %1346 = vmatprep.subr.bf16.mxu0 %v1603_v11 }
 0x11b   :  { %1276 = vmatprep.subr.bf16.mxu1 %v1476_v37 }
 0x11d   :  { %1347 = vmatpush3.bf16.msra.mxu0 %v1477_v38 }
 0x11e   :  { %1277 = vmatpush3.bf16.msra.mxu1 %v1478_v39  ;;  %1348 = vmatprep.subr.bf16.mxu0 %v1603_v11 }
 0x11f   :  { %1278 = vmatprep.subr.bf16.mxu1 %v1479_v40 }
 0x121   :  { %1349 = vmatpush3.bf16.msra.mxu0 %v1480_v41 }
 0x122   :  { %1279 = vmatpush3.bf16.msra.mxu1 %v1481_v42  ;;  %1354 = vmatprep.subr.bf16.mxu0 %v1603_v11 }
 0x123   :  { %1280 = vmatprep.subr.bf16.mxu1 %v1482_v43 }
 0x124   :  { %1351 = vmatmul.mubr.bf16.vlgmr.msra.gmra.mxu0 %v207_v23 }
 0x125   :  { %1370 = vmatprep.mubr.msk.bf16.mxu0 %vm1604_vm2, %v1603_v11  ;;  %1355 = vmatpush3.bf16.msra.mxu0 %v1500_v0 }
 0x126   :  { %1281 = vmatpush3.bf16.msra.mxu1 %v1483_v44  ;;  %1356 = vmatprep.subr.bf16.mxu0 %v1603_v11 }
 0x127   :  { %1297 = vmatprep.subr.bf16.mxu1 %v1484_v45  ;;  %v1239_v45 = vld [vmem:[%s1724_s6] ss:$0 sm:$0xff] }
 0x129   :  { %820 = vmatmul.mubr.bf16.vlgmr.msra.gmra.mxu1 %v1680_v15  ;;  %1357 = vmatpush3.bf16.msra.mxu0 %v1501_v1 }
 0x12a   :  { %1298 = vmatpush3.bf16.msra.mxu1 %v1485_v46  ;;  %1358 = vmatprep.subr.bf16.mxu0 %v1603_v11 }
 0x12b   :  { %1299 = vmatprep.subr.bf16.mxu1 %v1486_v47 }
 0x12d   :  { %1359 = vmatpush3.bf16.msra.mxu0 %v1502_v2 }
 0x12e   :  { %1300 = vmatpush3.bf16.msra.mxu1 %v1487_v48  ;;  %1360 = vmatprep.subr.bf16.mxu0 %v1603_v11 }
 0x12f   :  { %1301 = vmatprep.subr.bf16.mxu1 %v1488_v49 }
 0x131   :  { %1361 = vmatpush3.bf16.msra.mxu0 %v1503_v3 }
 0x132   :  { %1302 = vmatpush3.bf16.msra.mxu1 %v1489_v50  ;;  %1362 = vmatprep.subr.bf16.mxu0 %v1603_v11 }
 0x133   :  { %1303 = vmatprep.subr.bf16.mxu1 %v1490_v51 }
 0x135   :  { %1363 = vmatpush3.bf16.msra.mxu0 %v1504_v5 }
 0x136   :  { %1304 = vmatpush3.bf16.msra.mxu1 %v1491_v52  ;;  %1364 = vmatprep.subr.bf16.mxu0 %v1603_v11 }
 0x137   :  { %1305 = vmatprep.subr.bf16.mxu1 %v1492_v53 }
 0x139   :  { %1365 = vmatpush3.bf16.msra.mxu0 %v1505_v6 }
 0x13a   :  { %1306 = vmatpush3.bf16.msra.mxu1 %v1493_v54  ;;  %1366 = vmatprep.subr.bf16.mxu0 %v1603_v11 }
 0x13b   :  { %1307 = vmatprep.subr.bf16.mxu1 %v1494_v55 }
 0x13d   :  { %1367 = vmatpush3.bf16.msra.mxu0 %v1506_v7 }
 0x13e   :  { %1308 = vmatpush3.bf16.msra.mxu1 %v1495_v56  ;;  %1368 = vmatprep.subr.bf16.mxu0 %v1603_v11 }
 0x13f   :  { %1309 = vmatprep.subr.bf16.mxu1 %v1496_v57 }
 0x141   :  { %1369 = vmatpush3.bf16.msra.mxu0 %v1507_v8 }
 0x142   :  { %1310 = vmatpush3.bf16.msra.mxu1 %v1497_v58 }
 0x143   :  { %1311 = vmatprep.subr.bf16.mxu1 %v1498_v59 }
 0x146   :  { %1312 = vmatpush3.bf16.msra.mxu1 %v1499_v62 }
 0x1c4   :  { %v739_v12 = vpop.f32.mrf.mxu0 }
 0x1c5   :  { %v740_v15 = vadd.f32 %v739_v12, %v309_v10 }
 0x1c6   :  { %v741_v14 = vpop.f32.mrf.mxu0 }
 0x1c7   :  { %v742_v18 = vadd.f32 %v741_v14, %v313_v13 }
 0x1c8   :  { %v743_v16 = vpop.f32.mrf.mxu0 }
 0x1c9   :  { %v780_v17 = vpop.f32.mrf.mxu1 }
 0x1ca   :  { %v781_v19 = vadd.f32 %v780_v17, %v740_v15  ;;  %v744_v11 = vpop.f32.mrf.mxu0 }
 0x1cb   :  { %v782_v20 = vpop.f32.mrf.mxu1 }
 0x1cc   :  { %v783_v21 = vadd.f32 %v782_v20, %v742_v18  ;;  %v867_v22 = vmax.f32 %v781_v19, 0.0 }
 0x1cd   :  { %v784_v23 = vpop.f32.mrf.mxu1 }
 0x1ce   :  { %v868_v24 = vmax.f32 %v783_v21, 0.0  ;;  %v870_v27 = vpack.c.bf16 %v867_v22, %v867_v22 }
 0x1cf   :  { %v785_v25 = vpop.f32.mrf.mxu1 }
 0x1d0   :  { %v871_v26 = vpack.c.bf16 %v868_v24, %v868_v24 }
 0x1d2   :  { %1104 = vmatprep.mubr.bf16.mxu1 %v871_v26 }
 0x1d3   :  { %1105 = vmatmul.mubr.bf16.vlgmr.msra.gmra.mxu1 %v870_v27 }
 0x1e4   :  { %v861_v61 = vpop.f32.mrf.mxu0 }
 0x1e6   :  { %v1352_v28 = vpop.f32.mrf.mxu0 }
 0x1e8   :  { %v864_v63 = vpop.f32.mrf.mxu0 }
 0x1e9   :  { %v1282_v29 = vpop.f32.mrf.mxu1 }
 0x1ea   :  { %v1353_v30 = vpop.f32.mrf.mxu0 }
 0x1eb   :  { %v1283_v32 = vpop.f32.mrf.mxu1 }
 0x1ec   :  { %v1284_v33 = vadd.f32 %v1283_v32, %v1282_v29 }
 0x1ed   :  { %v1285_v34 = vpop.f32.mrf.mxu1 }
 0x1ee   :  { %v822_v35 = vadd.f32 %v1284_v33, %v317_v31 }
 0x1ef   :  { %v1286_v36 = vpop.f32.mrf.mxu1 }
 0x1f0   :  { %v862_v37 = vadd.f32 %v861_v61, %v822_v35 }
 0x1f2   :  { %v869_v38 = vmax.f32 %v862_v37, 0.0 }
 0x1f4   :  { %v872_v39 = vpack.c.bf16 %v869_v38, %v869_v38 }
 0x1f6   :  { %1371 = vmatmul.mubr.bf16.vlgmr.msra.gmra.mxu0 %v872_v39 }
 0x293   :  { %v1313_v40 = vpop.f32.mrf.mxu1 }
 0x295   :  { %v1314_v41 = vpop.f32.mrf.mxu1 }
 0x296   :  { %v1315_v44 = vadd.f32 %v1314_v41, %v1313_v40 }
 0x297   :  { %v1316_v42 = vpop.f32.mrf.mxu1 }
 0x298   :  { %v1107_v60 = vadd.f32 %v1315_v44, %v1239_v45 }
 0x299   :  { %v1317_v43 = vpop.f32.mrf.mxu1 }
 0x2b6   :  { %v1146_v4 = vpop.f32.mrf.mxu0 }
 0x2b7   :  { %v1147_v46 = vadd.f32 %v1146_v4, %v1107_v60 }
 0x2b8   :  { %v1372_v47 = vpop.f32.mrf.mxu0 }
 0x2b9   :  { %v1152_v48 = vpack.c.bf16 %v1147_v46, %v1147_v46 }
 0x2ba   :  { %v1149_v49 = vpop.f32.mrf.mxu0 }
 0x2bb   :  { %1153 = vst [vmem:[%s1725_s7] sm:$0x1] %v1152_v48 }
 0x2bc   :  { %v1373_v50 = vpop.f32.mrf.mxu0 }
 0x2bd   :  { %1158 = vsyncpa [#allocation3], 1 }
 0x2be   :  { %1159 = vsyncpa [#allocation5], 1 }
 0x2bf   :  { %1160 = vsyncpa [#allocation8], 1 }

</bundles_post_ra>
